<compile_context>
chip_gen: v6e
topology: v6e:2x2x1
jax: 0.10.0
libtpu: 0.0.40
codegen_flags: <defaults>
</compile_context>

<pallas_src>
import jax
import jax.numpy as jnp
from jax.experimental import pallas as pl
from jax.experimental.pallas import tpu as pltpu

LANES = 128
SUBLANES = 16   # bf16 sublane packing: keep batch tiles multiples of 16


def _round_up(x, m):
    return (x + m - 1) // m * m


def _cdiv(a, b):
    return -(-a // b)


# ----------------------------- Pallas kernel -------------------------------
def _score_kernel(pooled_ref, w1_ref, b1_ref, w2_ref, b2_ref, out_ref):
    # pooled_ref : (TB, 128) bf16  max-pooled activations, K = C*25 zero-padded to 128 lanes
    # w1_ref     : (128, 128) f32  im2col conv weight with eval-mode BN scale folded in
    # b1_ref     : (1, 128)   f32  folded conv + BN bias
    # w2_ref     : (128, 128) f32  Linear weight transposed
    # b2_ref     : (1, 128)   f32  Linear bias
    # out_ref    : (TB, 128)  f32  lane-dense output slab
    pooled = pooled_ref[...].astype(jnp.float32)                         # bf16 -> f32 (VPU, slack)
    # Conv2d(C,64,5) on the 5x5 pooled map + folded BatchNorm -> one MXU matmul.
    h = jnp.dot(pooled, w1_ref[...],
                preferred_element_type=jnp.float32) + b1_ref[...]        # (TB, 128)
    h = jnp.maximum(h, 0.0)                                              # ReLU
    # reshape(b, -1) is identity (1x1 conv output); Linear -> second MXU matmul.
    out_ref[...] = jnp.dot(h, w2_ref[...],
                           preferred_element_type=jnp.float32) + b2_ref[...]


# ------------------------------ wrapper -------------------------------------
def score_forward(x, w_conv, b_conv, gamma, beta, rmean, rvar, w_fc, b_fc,
                  eps=1e-5, block_b=1024):
    """Pallas implementation of score.forward for NCHW input x."""
    B, C, H, W = x.shape
    Hp, Wp = H // 5, W // 5
    assert Hp == 5 and Wp == 5, "conv output must be 1x1 for this kernel config"
    K = C * Hp * Wp
    assert K <= LANES, "C*25 must fit in one 128-lane tile for this kernel"
    out_channel, n = w_fc.shape
    assert n == 64

    # --- MaxPool2d(5,5): the one unavoidable HBM pass over x, done by XLA. ---
    # TODO(synk): fusing this pool into the kernel (raw x via memory_space=pl.ANY
    # + manual strided DMA) would save only the tiny pooled write/read (~5%).
    pooled = jax.lax.reduce_window(
        x.astype(jnp.float32), -jnp.inf, jax.lax.max,
        (1, 1, 5, 5), (1, 1, 5, 5), 'VALID')                 # (B, C, 5, 5)
    # Contiguous reshape: k = c*25 + hp*5 + wp, same ordering as w_conv.reshape(64, K).
    pooled = pooled.reshape(B, K).astype(jnp.bfloat16)       # bf16 HBM stream

    # --- Grid / batch tiling ---------------------------------------------------
    # >= 2 steps when B > 8 so v7x's two TensorCores both get work; TB chosen from
    # the actual step count (rounded to 16 sublanes) to avoid large tail padding.
    if B <= 8:
        num_steps = 1
    else:
        num_steps = max(2, _cdiv(B, block_b))
    TB = min(max(block_b, SUBLANES), _round_up(_cdiv(B, num_steps), SUBLANES))
    Bp = _round_up(B, TB)
    # K 100->128 lane padding costs <0.3% of total HBM traffic now (pooled slab is
    # tiny) and keeps every load/dot a full unmasked 128-lane tile.
    pooled = jnp.pad(pooled, ((0, Bp - B), (0, LANES - K)))

    # --- Fold BatchNorm (eval running stats) into conv weight/bias; pad to 128 ---
    # TODO(synk): training-mode BatchNorm batch statistics are not implemented;
    # eval-mode running statistics are folded into an affine transform.
    bnscale = gamma / jnp.sqrt(rvar + eps)
    w1 = (w_conv.reshape(64, K).T * bnscale[None, :]).astype(jnp.float32)   # (K, 64)
    b1 = ((b_conv - rmean) * bnscale + beta).astype(jnp.float32)            # (64,)
    w1 = jnp.pad(w1, ((0, LANES - K), (0, LANES - 64)))
    b1 = jnp.pad(b1, (0, LANES - 64)).reshape(1, LANES)
    w2 = jnp.pad(w_fc.T.astype(jnp.float32),
                 ((0, LANES - n), (0, LANES - out_channel)))
    b2 = jnp.pad(b_fc.astype(jnp.float32), (0, LANES - out_channel)).reshape(1, LANES)

    grid = (Bp // TB,)

    # Explicit VMEM budget: double-buffered pooled/output blocks + resident weights.
    in_block_bytes = TB * LANES * 2          # bf16 pooled block
    out_block_bytes = TB * LANES * 4         # f32 output block
    weight_bytes = (2 * LANES * LANES + 2 * LANES) * 4
    vmem_limit = max(
        2 * (in_block_bytes + out_block_bytes + weight_bytes) + (4 << 20),
        16 << 20)

    out = pl.pallas_call(
        _score_kernel,
        out_shape=jax.ShapeDtypeStruct((Bp, LANES), jnp.float32),
        grid_spec=pltpu.PrefetchScalarGridSpec(
            num_scalar_prefetch=0,
            grid=grid,
            in_specs=[
                pl.BlockSpec((TB, LANES), lambda i: (i, 0)),        # pooled (bf16)
                pl.BlockSpec((LANES, LANES), lambda i: (0, 0)),     # w1 (resident)
                pl.BlockSpec((1, LANES), lambda i: (0, 0)),         # b1 (resident)
                pl.BlockSpec((LANES, LANES), lambda i: (0, 0)),     # w2 (resident)
                pl.BlockSpec((1, LANES), lambda i: (0, 0)),         # b2 (resident)
            ],
            out_specs=pl.BlockSpec((TB, LANES), lambda i: (i, 0)),
        ),
        compiler_params=pltpu.CompilerParams(
            dimension_semantics=("parallel",),
            vmem_limit_bytes=int(vmem_limit),
        ),
    )(pooled, w1, b1, w2, b2)

    return out[:B, :out_channel]


# --------------------------- pure-JAX reference ------------------------------
def score_reference(x, w_conv, b_conv, gamma, beta, rmean, rvar, w_fc, b_fc,
                    eps=1e-5):
    pooled = jax.lax.reduce_window(x, -jnp.inf, jax.lax.max,
                                   (1, 1, 5, 5), (1, 1, 5, 5), 'VALID')
    conv = jax.lax.conv_general_dilated(
        pooled, w_conv, (1, 1), 'VALID',
        dimension_numbers=('NCHW', 'OIHW', 'NCHW'))
    conv = conv + b_conv[None, :, None, None]
    bn = ((conv - rmean[None, :, None, None])
          / jnp.sqrt(rvar[None, :, None, None] + eps)
          * gamma[None, :, None, None] + beta[None, :, None, None])
    act = jnp.maximum(bn, 0.0)
    flat = act.reshape(x.shape[0], -1)
    return flat @ w_fc.T + b_fc


if __name__ == "__main__":
    # Shapes consistent with the module: in_channel=4, H=W=25 -> MaxPool(5,5)
    # gives 5x5 -> Conv2d(4,64,5) gives 64x1x1 -> n=64, out_channel=10.
    B, C, H, W = 2, 4, 25, 25
    out_channel, n = 10, 64

    key = jax.random.PRNGKey(0)
    ks = jax.random.split(key, 9)
    x = jax.random.normal(ks[0], (B, C, H, W), jnp.float32)

    w_conv = 0.05 * jax.random.normal(ks[1], (64, C, 5, 5), jnp.float32)
    b_conv = 0.05 * jax.random.normal(ks[2], (64,), jnp.float32)
    gamma = 1.0 + 0.1 * jax.random.normal(ks[3], (64,), jnp.float32)
    beta = 0.1 * jax.random.normal(ks[4], (64,), jnp.float32)
    rmean = 0.1 * jax.random.normal(ks[5], (64,), jnp.float32)
    rvar = 0.5 + 0.5 * jnp.abs(jax.random.normal(ks[6], (64,), jnp.float32))
    w_fc = 0.1 * jax.random.normal(ks[7], (out_channel, n), jnp.float32)
    b_fc = 0.1 * jax.random.normal(ks[8], (out_channel,), jnp.float32)

    score_fn = jax.jit(score_forward)
    out = score_fn(x, w_conv, b_conv, gamma, beta, rmean, rvar, w_fc, b_fc)
    out = jax.block_until_ready(out)

    ref = score_reference(x, w_conv, b_conv, gamma, beta, rmean, rvar, w_fc, b_fc)
    ref = jax.block_until_ready(ref)

    assert out.shape == (B, out_channel)
    # Tolerance loosened vs f32-only version: pooled activations cross HBM in bf16.
    assert jnp.allclose(out, ref, atol=1e-2, rtol=1e-2), (out, ref)
    print("KERNEL_OK")
</pallas_src>

<mosaic_0001>
module attributes {stable_mosaic.version = 11 : i64} {
  func.func @_score_kernel(%arg0: i32, %arg1: memref<16x128xbf16, #tpu.memory_space<vmem>>, %arg2: memref<128x128xf32, #tpu.memory_space<vmem>>, %arg3: memref<1x128xf32, #tpu.memory_space<vmem>>, %arg4: memref<128x128xf32, #tpu.memory_space<vmem>>, %arg5: memref<1x128xf32, #tpu.memory_space<vmem>>, %arg6: memref<16x128xf32, #tpu.memory_space<vmem>>) attributes {dimension_semantics = [#tpu.dimension_semantics<parallel>], iteration_bounds = array<i64: 1>, scalar_prefetch = 0 : i64, scratch_operands = 0 : i64, tpu.core_type = #tpu.core_type<tc>, window_params = [{transform_indices = @transform_0, window_bounds = array<i64: 16, 128>}, {pipeline_mode = #tpu.pipeline_mode<synchronous>, transform_indices = @transform_1, window_bounds = array<i64: 128, 128>}, {pipeline_mode = #tpu.pipeline_mode<synchronous>, transform_indices = @transform_2, window_bounds = array<i64: 1, 128>}, {pipeline_mode = #tpu.pipeline_mode<synchronous>, transform_indices = @transform_3, window_bounds = array<i64: 128, 128>}, {pipeline_mode = #tpu.pipeline_mode<synchronous>, transform_indices = @transform_4, window_bounds = array<i64: 1, 128>}, {transform_indices = @transform_5, window_bounds = array<i64: 16, 128>}]} {
    %c0 = arith.constant 0 : index
    %c0_0 = arith.constant 0 : index
    %0 = vector.load %arg1[%c0, %c0_0] : memref<16x128xbf16, #tpu.memory_space<vmem>>, vector<16x128xbf16>
    %1 = arith.extf %0 : vector<16x128xbf16> to vector<16x128xf32>
    %c0_1 = arith.constant 0 : index
    %c0_2 = arith.constant 0 : index
    %2 = vector.load %arg2[%c0_1, %c0_2] : memref<128x128xf32, #tpu.memory_space<vmem>>, vector<128x128xf32>
    %cst = arith.constant dense<0.000000e+00> : vector<16x128xf32>
    %3 = tpu.matmul %1, %2, %cst {dimension_numbers = #tpu.dot_dimension_numbers<[1], [0], [0], [1], [0, 0, 1, 1], [], []>} : vector<16x128xf32>, vector<128x128xf32>, vector<16x128xf32> -> vector<16x128xf32>
    %c0_3 = arith.constant 0 : index
    %c0_4 = arith.constant 0 : index
    %4 = vector.load %arg3[%c0_3, %c0_4] : memref<1x128xf32, #tpu.memory_space<vmem>>, vector<1x128xf32>
    %5 = vector.broadcast %4 : vector<1x128xf32> to vector<16x128xf32>
    %6 = arith.addf %3, %5 : vector<16x128xf32>
    %cst_5 = arith.constant 0.000000e+00 : f32
    %7 = vector.broadcast %cst_5 : f32 to vector<16x128xf32>
    %8 = arith.maximumf %6, %7 : vector<16x128xf32>
    %c0_6 = arith.constant 0 : index
    %c0_7 = arith.constant 0 : index
    %9 = vector.load %arg4[%c0_6, %c0_7] : memref<128x128xf32, #tpu.memory_space<vmem>>, vector<128x128xf32>
    %cst_8 = arith.constant dense<0.000000e+00> : vector<16x128xf32>
    %10 = tpu.matmul %8, %9, %cst_8 {dimension_numbers = #tpu.dot_dimension_numbers<[1], [0], [0], [1], [0, 0, 1, 1], [], []>} : vector<16x128xf32>, vector<128x128xf32>, vector<16x128xf32> -> vector<16x128xf32>
    %c0_9 = arith.constant 0 : index
    %c0_10 = arith.constant 0 : index
    %11 = vector.load %arg5[%c0_9, %c0_10] : memref<1x128xf32, #tpu.memory_space<vmem>>, vector<1x128xf32>
    %12 = vector.broadcast %11 : vector<1x128xf32> to vector<16x128xf32>
    %13 = arith.addf %10, %12 : vector<16x128xf32>
    %c0_11 = arith.constant 0 : index
    %c0_12 = arith.constant 0 : index
    %14 = vector.load %arg6[%c0_11, %c0_12] : memref<16x128xf32, #tpu.memory_space<vmem>>, vector<16x128xf32>
    tpu.vector_store %arg6[%c0_11, %c0_12], %13 {strides = array<i32>} : memref<16x128xf32, #tpu.memory_space<vmem>>, vector<16x128xf32>,
    return
  }
  func.func @transform_0(%arg0: i32) -> (i32, i32) {
    %c0_i32 = arith.constant 0 : i32
    %c0_i32_0 = arith.constant 0 : i32
    return %arg0, %c0_i32 : i32, i32
  }
  func.func @transform_1(%arg0: i32) -> (i32, i32) {
    %c0_i32 = arith.constant 0 : i32
    %c0_i32_0 = arith.constant 0 : i32
    %c0_i32_1 = arith.constant 0 : i32
    return %c0_i32, %c0_i32_0 : i32, i32
  }
  func.func @transform_2(%arg0: i32) -> (i32, i32) {
    %c0_i32 = arith.constant 0 : i32
    %c0_i32_0 = arith.constant 0 : i32
    %c0_i32_1 = arith.constant 0 : i32
    return %c0_i32, %c0_i32_0 : i32, i32
  }
  func.func @transform_3(%arg0: i32) -> (i32, i32) {
    %c0_i32 = arith.constant 0 : i32
    %c0_i32_0 = arith.constant 0 : i32
    %c0_i32_1 = arith.constant 0 : i32
    return %c0_i32, %c0_i32_0 : i32, i32
  }
  func.func @transform_4(%arg0: i32) -> (i32, i32) {
    %c0_i32 = arith.constant 0 : i32
    %c0_i32_0 = arith.constant 0 : i32
    %c0_i32_1 = arith.constant 0 : i32
    return %c0_i32, %c0_i32_0 : i32, i32
  }
  func.func @transform_5(%arg0: i32) -> (i32, i32) {
    %c0_i32 = arith.constant 0 : i32
    %c0_i32_0 = arith.constant 0 : i32
    return %arg0, %c0_i32 : i32, i32
  }
}

</mosaic_0001>

<bundles_post_ra>
// kernel: score_forward.1
= control target key start
LH: loop header
LB: loop body
LE: loop exit
PB: predicated region body
PF: predicated region fallthrough
CT: control target
= control target key end

     0   :  { %s485_s1 = inlined_call_operand.vmem [shape: f32[128,128], index: 1, kind: input, shape index: {}]   ;;  %s486_s0 = inlined_call_operand.vmem [shape: bf16[16,128], index: 0, kind: input, shape index: {}]   ;;  %s487_s3 = inlined_call_operand.vmem [shape: f32[128,128], index: 3, kind: input, shape index: {}]   ;;  %s488_s2 = inlined_call_operand.vmem [shape: f32[1,128], index: 2, kind: input, shape index: {}]   ;;  %s489_s4 = inlined_call_operand.vmem [shape: f32[1,128], index: 4, kind: input, shape index: {}]   ;;  %s490_s5 = inlined_call_operand.vmem [shape: f32[16,128], index: 5, kind: output, shape index: {}]  }
   0x1   :  { %v39_v0 = vld [vmem:[%s485_s1 + $0x78] sm:$0xff]  ;;  %v38_v1 = vld [vmem:[%s485_s1 + $0x70] sm:$0xff]  ;;  %v37_v2 = vld [vmem:[%s485_s1 + $0x68] sm:$0xff] }
   0x2   :  { %270 = vmatprep.subr.mxu0 %v39_v0  ;;  %v36_v3 = vld [vmem:[%s485_s1 + $0x60] sm:$0xff]  ;;  %v139_v5 = vld [vmem:[%s487_s3 + $0x78] sm:$0xff]  ;;  %v138_v8 = vld [vmem:[%s487_s3 + $0x70] sm:$0xff] }
   0x3   :  { %271 = vmatpush3.msra.mxu0 %v39_v0  ;;  %v385_v4 = vld [vmem:[%s486_s0] sm:$0xff]   ;;  %v35_v6 = vld [vmem:[%s485_s1 + $0x58] sm:$0xff]  ;;  %305 = vmatprep.subr.mxu1 %v139_v5  ;;  %v34_v9 = vld [vmem:[%s485_s1 + $0x50] sm:$0xff] }
   0x4   :  { %272 = vmatprep.subr.mxu0 %v38_v1  ;;  %v232_v7 = vunpack.c.l.bf16 %v385_v4  ;;  %306 = vmatpush3.msra.mxu1 %v139_v5  ;;  %v137_v10 = vld [vmem:[%s487_s3 + $0x68] sm:$0xff]  ;;  %v136_v12 = vld [vmem:[%s487_s3 + $0x60] sm:$0xff]  ;;  %v135_v14 = vld [vmem:[%s487_s3 + $0x58] sm:$0xff]  ;;  %v233_v30 = vunpack.c.h.bf16 %v385_v4 }
   0x5   :  { %273 = vmatpush3.msra.mxu0 %v38_v1  ;;  %307 = vmatprep.subr.mxu1 %v138_v8  ;;  %v33_v11 = vld [vmem:[%s485_s1 + $0x48] sm:$0xff]  ;;  %v32_v13 = vld [vmem:[%s485_s1 + $0x40] sm:$0xff]  ;;  %v31_v15 = vld [vmem:[%s485_s1 + $0x38] sm:$0xff] }
   0x6   :  { %274 = vmatprep.subr.mxu0 %v37_v2  ;;  %302 = vmatprep.mubr.f32.mxu0 %v232_v7  ;;  %v134_v16 = vld [vmem:[%s487_s3 + $0x50] sm:$0xff]  ;;  %v133_v18 = vld [vmem:[%s487_s3 + $0x48] sm:$0xff]  ;;  %v132_v20 = vld [vmem:[%s487_s3 + $0x40] sm:$0xff] }
   0x7   :  { %275 = vmatpush3.msra.mxu0 %v37_v2  ;;  %308 = vmatpush3.msra.mxu1 %v138_v8  ;;  %v30_v17 = vld [vmem:[%s485_s1 + $0x30] sm:$0xff]  ;;  %v29_v19 = vld [vmem:[%s485_s1 + $0x28] sm:$0xff]  ;;  %v28_v21 = vld [vmem:[%s485_s1 + $0x20] sm:$0xff] }
   0x8   :  { %276 = vmatprep.subr.mxu0 %v36_v3  ;;  %309 = vmatprep.subr.mxu1 %v137_v10  ;;  %v131_v22 = vld [vmem:[%s487_s3 + $0x38] sm:$0xff]  ;;  %v130_v24 = vld [vmem:[%s487_s3 + $0x30] sm:$0xff]  ;;  %v129_v26 = vld [vmem:[%s487_s3 + $0x28] sm:$0xff] }
   0x9   :  { %277 = vmatpush3.msra.mxu0 %v36_v3  ;;  %310 = vmatpush3.msra.mxu1 %v137_v10  ;;  %v27_v23 = vld [vmem:[%s485_s1 + $0x18] sm:$0xff]  ;;  %v26_v25 = vld [vmem:[%s485_s1 + $0x10] sm:$0xff]  ;;  %v25_v27 = vld [vmem:[%s485_s1 + $0x8] sm:$0xff] }
   0xa   :  { %278 = vmatprep.subr.mxu0 %v35_v6  ;;  %311 = vmatprep.subr.mxu1 %v136_v12  ;;  %v128_v28 = vld [vmem:[%s487_s3 + $0x20] sm:$0xff]  ;;  %v127_v31 = vld [vmem:[%s487_s3 + $0x18] sm:$0xff]  ;;  %v126_v32 = vld [vmem:[%s487_s3 + $0x10] sm:$0xff] }
   0xb   :  { %279 = vmatpush3.msra.mxu0 %v35_v6  ;;  %312 = vmatpush3.msra.mxu1 %v136_v12  ;;  %v24_v29 = vld [vmem:[%s485_s1] sm:$0xff]  ;;  %v125_v33 = vld [vmem:[%s487_s3 + $0x8] sm:$0xff] }
   0xc   :  { %280 = vmatprep.subr.mxu0 %v34_v9  ;;  %313 = vmatprep.subr.mxu1 %v135_v14  ;;  %v124_v34 = vld [vmem:[%s487_s3] sm:$0xff] }
   0xd   :  { %281 = vmatpush3.msra.mxu0 %v34_v9  ;;  %314 = vmatpush3.msra.mxu1 %v135_v14  ;;  %v228_v35 = vld [vmem:[%s488_s2] ss:$0 sm:$0xff] }
   0xe   :  { %282 = vmatprep.subr.mxu0 %v33_v11  ;;  %315 = vmatprep.subr.mxu1 %v134_v16  ;;  %v229_v42 = vld [vmem:[%s489_s4] ss:$0 sm:$0xff] }
   0xf   :  { %283 = vmatpush3.msra.mxu0 %v33_v11  ;;  %316 = vmatpush3.msra.mxu1 %v134_v16 }
  0x10   :  { %284 = vmatprep.subr.mxu0 %v32_v13  ;;  %317 = vmatprep.subr.mxu1 %v133_v18 }
  0x11   :  { %285 = vmatpush3.msra.mxu0 %v32_v13  ;;  %318 = vmatpush3.msra.mxu1 %v133_v18 }
  0x12   :  { %286 = vmatprep.subr.mxu0 %v31_v15  ;;  %319 = vmatprep.subr.mxu1 %v132_v20 }
  0x13   :  { %287 = vmatpush3.msra.mxu0 %v31_v15  ;;  %320 = vmatpush3.msra.mxu1 %v132_v20 }
  0x14   :  { %288 = vmatprep.subr.mxu0 %v30_v17  ;;  %321 = vmatprep.subr.mxu1 %v131_v22 }
  0x15   :  { %289 = vmatpush3.msra.mxu0 %v30_v17  ;;  %322 = vmatpush3.msra.mxu1 %v131_v22 }
  0x16   :  { %290 = vmatprep.subr.mxu0 %v29_v19  ;;  %323 = vmatprep.subr.mxu1 %v130_v24 }
  0x17   :  { %291 = vmatpush3.msra.mxu0 %v29_v19  ;;  %324 = vmatpush3.msra.mxu1 %v130_v24 }
  0x18   :  { %292 = vmatprep.subr.mxu0 %v28_v21  ;;  %325 = vmatprep.subr.mxu1 %v129_v26 }
  0x19   :  { %293 = vmatpush3.msra.mxu0 %v28_v21  ;;  %326 = vmatpush3.msra.mxu1 %v129_v26 }
  0x1a   :  { %294 = vmatprep.subr.mxu0 %v27_v23  ;;  %327 = vmatprep.subr.mxu1 %v128_v28 }
  0x1b   :  { %295 = vmatpush3.msra.mxu0 %v27_v23  ;;  %328 = vmatpush3.msra.mxu1 %v128_v28 }
  0x1c   :  { %296 = vmatprep.subr.mxu0 %v26_v25  ;;  %329 = vmatprep.subr.mxu1 %v127_v31 }
  0x1d   :  { %297 = vmatpush3.msra.mxu0 %v26_v25  ;;  %330 = vmatpush3.msra.mxu1 %v127_v31 }
  0x1e   :  { %298 = vmatprep.subr.mxu0 %v25_v27  ;;  %331 = vmatprep.subr.mxu1 %v126_v32 }
  0x1f   :  { %299 = vmatpush3.msra.mxu0 %v25_v27  ;;  %332 = vmatpush3.msra.mxu1 %v126_v32 }
  0x20   :  { %300 = vmatprep.subr.mxu0 %v24_v29  ;;  %333 = vmatprep.subr.mxu1 %v125_v33 }
  0x21   :  { %301 = vmatpush3.msra.mxu0 %v24_v29  ;;  %334 = vmatpush3.msra.mxu1 %v125_v33 }
  0x22   :  { %303 = vmatmul.mubr.f32.vlgmr.msra.gmra.mxu0 %v233_v30  ;;  %335 = vmatprep.subr.mxu1 %v124_v34 }
  0x23   :  { %336 = vmatpush3.msra.mxu1 %v124_v34 }
  0xe2   :  { %v304_v36 = vpop.f32.mrf.mxu0 }
  0xe3   :  { %v119_v37 = vadd.f32 %v304_v36, %v228_v35 }
  0xe4   :  { %v113_v38 = vpop.f32.mrf.mxu0 }
  0xe5   :  { %v114_v39 = vadd.f32 %v228_v35, %v113_v38  ;;  %v123_v41 = vmax.f32 %v119_v37, 0.0 }
  0xe7   :  { %v122_v40 = vmax.f32 %v114_v39, 0.0 }
  0xe9   :  { %337 = vmatprep.mubr.f32.mxu1 %v122_v40 }
  0xea   :  { %338 = vmatmul.mubr.f32.vlgmr.msra.gmra.mxu1 %v123_v41 }
 0x1aa   :  { %v339_v43 = vpop.f32.mrf.mxu1 }
 0x1ab   :  { %v219_v44 = vadd.f32 %v339_v43, %v229_v42 }
 0x1ac   :  { %v213_v45 = vpop.f32.mrf.mxu1 }
 0x1ad   :  { %223 = vst [vmem:[%s490_s5 + $0x8] sm:$0xff] %v219_v44  ;;  %v214_v46 = vadd.f32 %v229_v42, %v213_v45 }
 0x1af   :  { %222 = vst [vmem:[%s490_s5] sm:$0xff] %v214_v46 }

</bundles_post_ra>
